<compile_context>
chip_gen: v7x
topology: tpu7x:2x2x1
jax: 0.10.0
libtpu: 0.0.40
codegen_flags: <defaults>
</compile_context>

<pallas_src>
import functools
import math

import jax
import jax.numpy as jnp
from jax import lax
from jax.experimental import pallas as pl
from jax.experimental.pallas import tpu as pltpu


def _adaptive_embed_kernel(ids_ref, *refs, clusters, emb_scale, tm, hidden):
    """Fused gather + (optional) projection + mask + scale for all clusters.

    ids_ref : (tm, 1) int32 VMEM  -- flat token ids for this tile
    refs    : per cluster: table_ref (V_i, d_i) [, proj_ref (d_i, H)], then out_ref
    out_ref : (tm, H) f32 VMEM    -- output tile (written once)
    clusters: static tuple of (l_idx, r_idx, has_proj)
    """
    out_ref = refs[-1]
    param_refs = refs[:-1]

    ids = ids_ref[...]                                     # (tm, 1) int32
    acc = jnp.zeros((tm, hidden), jnp.float32)

    k = 0
    for (l_idx, r_idx, has_proj) in clusters:
        table_ref = param_refs[k]; k += 1
        proj_ref = None
        if has_proj:
            proj_ref = param_refs[k]; k += 1

        v_i = r_idx - l_idx
        # Local row index; ids outside [l_idx, r_idx) never match the iota,
        # so their one-hot row is all zeros -> cluster mask for free.
        local = ids - l_idx                                # (tm, 1)
        col = lax.broadcasted_iota(jnp.int32, (tm, v_i), 1)
        onehot = (col == local).astype(jnp.float32)        # (tm, V_i), exact 0/1
        emb = jnp.dot(onehot, table_ref[...].astype(jnp.float32),
                      preferred_element_type=jnp.float32)  # (tm, d_i)  MXU gather
        if has_proj:
            y = jnp.dot(emb, proj_ref[...].astype(jnp.float32),
                        preferred_element_type=jnp.float32)  # (tm, H)
        else:
            y = emb                                        # d_i == hidden
        acc = acc + y

    out_ref[...] = (acc * emb_scale).astype(out_ref.dtype)


def _pick_tm(M: int) -> int:
    # 256 rows fills the MXU M dimension (v5e 4x128, v6e/v7x 2x256); for tiny
    # M just round up to the sublane granule so a single grid step covers it.
    if M >= 256:
        return 256
    return max(8, -(-M // 8) * 8)


class AdaptiveEmbedding:
    """JAX/Pallas port of bert4torch's AdaptiveEmbedding (forward only)."""

    def __init__(self, vocab_size, embedding_size, hidden_size, cutoffs,
                 div_val=1, *, key, dtype=jnp.float32):
        self.vocab_size = vocab_size
        self.embedding_size = embedding_size
        self.hidden_size = hidden_size
        self.cutoffs = list(cutoffs) + [vocab_size]
        self.div_val = div_val
        self.emb_scale = hidden_size ** 0.5
        self.cutoff_ends = [0] + self.cutoffs

        self.emb_tables = []
        self.emb_projs = []   # stored (d_i, H); None when projection is skipped
        if div_val == 1:
            k_e, k_p = jax.random.split(key)
            self.emb_tables.append(
                jax.random.normal(k_e, (vocab_size, embedding_size), dtype))
            if hidden_size != embedding_size:
                self.emb_projs.append(
                    0.02 * jax.random.normal(k_p, (embedding_size, hidden_size), dtype))
            else:
                self.emb_projs.append(None)   # torch skips the projection here
            self.cluster_ends = [0, vocab_size]
        else:
            keys = jax.random.split(key, 2 * len(self.cutoffs))
            for i in range(len(self.cutoffs)):
                l, r = self.cutoff_ends[i], self.cutoff_ends[i + 1]
                d_i = embedding_size // (div_val ** i)
                self.emb_tables.append(
                    jax.random.normal(keys[2 * i], (r - l, d_i), dtype))
                self.emb_projs.append(
                    0.02 * jax.random.normal(keys[2 * i + 1], (d_i, hidden_size), dtype))
            self.cluster_ends = self.cutoff_ends

    def __call__(self, token_ids):
        orig_shape = token_ids.shape
        flat = token_ids.reshape(-1).astype(jnp.int32)
        M = flat.shape[0]
        H = self.hidden_size

        tm = _pick_tm(M)
        M_pad = -(-M // tm) * tm
        if M_pad != M:
            flat = jnp.pad(flat, (0, M_pad - M))           # padded rows sliced off below
        ids2d = flat.reshape(M_pad, 1)

        clusters = []
        params = []
        in_specs = [pl.BlockSpec((tm, 1), lambda i: (i, 0))]   # token ids, tiled
        for i, (table, proj) in enumerate(zip(self.emb_tables, self.emb_projs)):
            l, r = self.cluster_ends[i], self.cluster_ends[i + 1]
            has_proj = proj is not None
            clusters.append((l, r, has_proj))
            params.append(table)
            # Constant block index -> fetched once, stays resident in VMEM.
            in_specs.append(pl.BlockSpec(table.shape, lambda i: (0, 0)))
            if has_proj:
                params.append(proj)
                in_specs.append(pl.BlockSpec(proj.shape, lambda i: (0, 0)))

        kernel = functools.partial(
            _adaptive_embed_kernel, clusters=tuple(clusters),
            emb_scale=float(self.emb_scale), tm=tm, hidden=H)

        out = pl.pallas_call(
            kernel,
            out_shape=jax.ShapeDtypeStruct((M_pad, H), jnp.float32),
            grid_spec=pltpu.PrefetchScalarGridSpec(
                num_scalar_prefetch=0,
                grid=(M_pad // tm,),
                in_specs=in_specs,
                out_specs=pl.BlockSpec((tm, H), lambda i: (i, 0)),
            ),
            compiler_params=pltpu.CompilerParams(
                dimension_semantics=("parallel",),
            ),
        )(ids2d, *params)

        return out[:M].reshape(*orig_shape, H)


def adaptive_embedding_reference(token_ids, module: AdaptiveEmbedding):
    """Pure-JAX reference mirroring the PyTorch forward."""
    flat = token_ids.reshape(-1)
    M = flat.shape[0]
    out = jnp.zeros((M, module.hidden_size), jnp.float32)
    for i, (table, proj) in enumerate(zip(module.emb_tables, module.emb_projs)):
        l, r = module.cluster_ends[i], module.cluster_ends[i + 1]
        mask = (flat >= l) & (flat < r)
        lid = jnp.clip(flat - l, 0, table.shape[0] - 1)
        e = table[lid].astype(jnp.float32)
        y = e @ proj.astype(jnp.float32) if proj is not None else e
        out = out + jnp.where(mask[:, None], y, 0.0)
    out = out * module.emb_scale
    return out.reshape(*token_ids.shape, module.hidden_size)


def _run_case(vocab_size, embedding_size, hidden_size, cutoffs, div_val,
              batch, seq, seed):
    key = jax.random.PRNGKey(seed)
    k_params, k_ids = jax.random.split(key)
    module = AdaptiveEmbedding(vocab_size, embedding_size, hidden_size, cutoffs,
                               div_val=div_val, key=k_params)
    token_ids = jax.random.randint(k_ids, (batch, seq), 0, vocab_size,
                                   dtype=jnp.int32)
    out = jax.block_until_ready(module(token_ids))
    ref = adaptive_embedding_reference(token_ids, module)
    assert out.shape == (batch, seq, hidden_size), out.shape
    err = float(jnp.max(jnp.abs(out - ref)))
    assert jnp.allclose(out, ref, atol=1e-3, rtol=1e-3), err


if __name__ == "__main__":
    # div_val > 1 path: cluster 0 ids [0,64) -> dim 128, cluster 1 ids [64,192) -> dim 64
    _run_case(vocab_size=192, embedding_size=128, hidden_size=128,
              cutoffs=[64], div_val=2, batch=2, seq=8, seed=0)
    # div_val == 1 with projection (E != H)
    _run_case(vocab_size=160, embedding_size=64, hidden_size=128,
              cutoffs=[], div_val=1, batch=2, seq=8, seed=0)
    # div_val == 1 without projection (E == H): identity matmul skipped
    _run_case(vocab_size=160, embedding_size=128, hidden_size=128,
              cutoffs=[], div_val=1, batch=2, seq=8, seed=0)

    print("KERNEL_OK")
</pallas_src>

<mosaic_0001>
module attributes {stable_mosaic.version = 11 : i64} {
  func.func @_adaptive_embed_kernel(%arg0: i32, %arg1: memref<16x1xi32, #tpu.memory_space<vmem>>, %arg2: memref<64x128xf32, #tpu.memory_space<vmem>>, %arg3: memref<128x128xf32, #tpu.memory_space<vmem>>, %arg4: memref<128x64xf32, #tpu.memory_space<vmem>>, %arg5: memref<64x128xf32, #tpu.memory_space<vmem>>, %arg6: memref<16x128xf32, #tpu.memory_space<vmem>>) attributes {dimension_semantics = [#tpu.dimension_semantics<parallel>], iteration_bounds = array<i64: 1>, scalar_prefetch = 0 : i64, scratch_operands = 0 : i64, tpu.core_type = #tpu.core_type<tc>, window_params = [{transform_indices = @transform_0, window_bounds = array<i64: 16, 1>}, {pipeline_mode = #tpu.pipeline_mode<synchronous>, transform_indices = @transform_1, window_bounds = array<i64: 64, 128>}, {pipeline_mode = #tpu.pipeline_mode<synchronous>, transform_indices = @transform_2, window_bounds = array<i64: 128, 128>}, {pipeline_mode = #tpu.pipeline_mode<synchronous>, transform_indices = @transform_3, window_bounds = array<i64: 128, 64>}, {pipeline_mode = #tpu.pipeline_mode<synchronous>, transform_indices = @transform_4, window_bounds = array<i64: 64, 128>}, {transform_indices = @transform_5, window_bounds = array<i64: 16, 128>}]} {
    %c0 = arith.constant 0 : index
    %c0_0 = arith.constant 0 : index
    %0 = vector.load %arg1[%c0, %c0_0] : memref<16x1xi32, #tpu.memory_space<vmem>>, vector<16x1xi32>
    %cst = arith.constant 0.000000e+00 : f32
    %1 = vector.broadcast %cst : f32 to vector<16x128xf32>
    %c0_i32 = arith.constant 0 : i32
    %2 = vector.broadcast %c0_i32 : i32 to vector<16x1xi32>
    %3 = arith.subi %0, %2 : vector<16x1xi32>
    %4 = tpu.iota {dimensions = array<i32: 1>} : vector<16x64xi32>
    %5 = vector.broadcast %3 : vector<16x1xi32> to vector<16x64xi32>
    %6 = arith.cmpi eq, %4, %5 : vector<16x64xi32>
    %7 = arith.extui %6 : vector<16x64xi1> to vector<16x64xi32>
    %8 = arith.sitofp %7 : vector<16x64xi32> to vector<16x64xf32>
    %c0_1 = arith.constant 0 : index
    %c0_2 = arith.constant 0 : index
    %9 = vector.load %arg2[%c0_1, %c0_2] : memref<64x128xf32, #tpu.memory_space<vmem>>, vector<64x128xf32>
    %cst_3 = arith.constant dense<0.000000e+00> : vector<16x128xf32>
    %10 = tpu.matmul %8, %9, %cst_3 {dimension_numbers = #tpu.dot_dimension_numbers<[1], [0], [0], [1], [0, 0, 1, 1], [], []>} : vector<16x64xf32>, vector<64x128xf32>, vector<16x128xf32> -> vector<16x128xf32>
    %c0_4 = arith.constant 0 : index
    %c0_5 = arith.constant 0 : index
    %11 = vector.load %arg3[%c0_4, %c0_5] : memref<128x128xf32, #tpu.memory_space<vmem>>, vector<128x128xf32>
    %cst_6 = arith.constant dense<0.000000e+00> : vector<16x128xf32>
    %12 = tpu.matmul %10, %11, %cst_6 {dimension_numbers = #tpu.dot_dimension_numbers<[1], [0], [0], [1], [0, 0, 1, 1], [], []>} : vector<16x128xf32>, vector<128x128xf32>, vector<16x128xf32> -> vector<16x128xf32>
    %13 = arith.addf %1, %12 : vector<16x128xf32>
    %c64_i32 = arith.constant 64 : i32
    %14 = vector.broadcast %c64_i32 : i32 to vector<16x1xi32>
    %15 = arith.subi %0, %14 : vector<16x1xi32>
    %16 = tpu.iota {dimensions = array<i32: 1>} : vector<16x128xi32>
    %17 = vector.broadcast %15 : vector<16x1xi32> to vector<16x128xi32>
    %18 = arith.cmpi eq, %16, %17 : vector<16x128xi32>
    %19 = arith.extui %18 : vector<16x128xi1> to vector<16x128xi32>
    %20 = arith.sitofp %19 : vector<16x128xi32> to vector<16x128xf32>
    %c0_7 = arith.constant 0 : index
    %c0_8 = arith.constant 0 : index
    %21 = vector.load %arg4[%c0_7, %c0_8] : memref<128x64xf32, #tpu.memory_space<vmem>>, vector<128x64xf32>
    %cst_9 = arith.constant dense<0.000000e+00> : vector<16x64xf32>
    %22 = tpu.matmul %20, %21, %cst_9 {dimension_numbers = #tpu.dot_dimension_numbers<[1], [0], [0], [1], [0, 0, 1, 1], [], []>} : vector<16x128xf32>, vector<128x64xf32>, vector<16x64xf32> -> vector<16x64xf32>
    %c0_10 = arith.constant 0 : index
    %c0_11 = arith.constant 0 : index
    %23 = vector.load %arg5[%c0_10, %c0_11] : memref<64x128xf32, #tpu.memory_space<vmem>>, vector<64x128xf32>
    %cst_12 = arith.constant dense<0.000000e+00> : vector<16x128xf32>
    %24 = tpu.matmul %22, %23, %cst_12 {dimension_numbers = #tpu.dot_dimension_numbers<[1], [0], [0], [1], [0, 0, 1, 1], [], []>} : vector<16x64xf32>, vector<64x128xf32>, vector<16x128xf32> -> vector<16x128xf32>
    %25 = arith.addf %13, %24 : vector<16x128xf32>
    %cst_13 = arith.constant 11.3137083 : f32
    %26 = vector.broadcast %cst_13 : f32 to vector<16x128xf32>
    %27 = arith.mulf %25, %26 : vector<16x128xf32>
    %c0_14 = arith.constant 0 : index
    %c0_15 = arith.constant 0 : index
    %28 = vector.load %arg6[%c0_14, %c0_15] : memref<16x128xf32, #tpu.memory_space<vmem>>, vector<16x128xf32>
    tpu.vector_store %arg6[%c0_14, %c0_15], %27 {strides = array<i32>} : memref<16x128xf32, #tpu.memory_space<vmem>>, vector<16x128xf32>,
    return
  }
  func.func @transform_0(%arg0: i32) -> (i32, i32) {
    %c0_i32 = arith.constant 0 : i32
    %c0_i32_0 = arith.constant 0 : i32
    return %arg0, %c0_i32 : i32, i32
  }
  func.func @transform_1(%arg0: i32) -> (i32, i32) {
    %c0_i32 = arith.constant 0 : i32
    %c0_i32_0 = arith.constant 0 : i32
    %c0_i32_1 = arith.constant 0 : i32
    return %c0_i32, %c0_i32_0 : i32, i32
  }
  func.func @transform_2(%arg0: i32) -> (i32, i32) {
    %c0_i32 = arith.constant 0 : i32
    %c0_i32_0 = arith.constant 0 : i32
    %c0_i32_1 = arith.constant 0 : i32
    return %c0_i32, %c0_i32_0 : i32, i32
  }
  func.func @transform_3(%arg0: i32) -> (i32, i32) {
    %c0_i32 = arith.constant 0 : i32
    %c0_i32_0 = arith.constant 0 : i32
    %c0_i32_1 = arith.constant 0 : i32
    return %c0_i32, %c0_i32_0 : i32, i32
  }
  func.func @transform_4(%arg0: i32) -> (i32, i32) {
    %c0_i32 = arith.constant 0 : i32
    %c0_i32_0 = arith.constant 0 : i32
    %c0_i32_1 = arith.constant 0 : i32
    return %c0_i32, %c0_i32_0 : i32, i32
  }
  func.func @transform_5(%arg0: i32) -> (i32, i32) {
    %c0_i32 = arith.constant 0 : i32
    %c0_i32_0 = arith.constant 0 : i32
    return %arg0, %c0_i32 : i32, i32
  }
}

</mosaic_0001>

<bundles_post_ra>
// kernel: tpu_custom_call.1
= control target key start
LH: loop header
LB: loop body
LE: loop exit
PB: predicated region body
PF: predicated region fallthrough
CT: control target
= control target key end

     0   :  { %10 = vsyncpa [#allocation3], 0  ;;  %s975_s0 = inlined_call_operand.vmem [shape: s32[16,1], index: 0, kind: input, shape index: {}]   ;;  %s976_s1 = inlined_call_operand.vmem [shape: f32[64,128], index: 1, kind: input, shape index: {}]   ;;  %s977_s2 = inlined_call_operand.vmem [shape: f32[128,128], index: 2, kind: input, shape index: {}]   ;;  %s978_s3 = inlined_call_operand.vmem [shape: f32[128,64], index: 3, kind: input, shape index: {}]   ;;  %s979_s4 = inlined_call_operand.hbm [shape: f32[64,128], index: 4, kind: input, shape index: {}]   ;;  %s980_s5 = inlined_call_operand.hbm [shape: f32[16,128], index: 5, kind: output, shape index: {}]  }
   0x1   :  { %11 = vsyncpa [#allocation4], 0  ;;  %s778_s18 = smov [#allocation2]   ;;  %s730_s22 = scalar_lea.hbm %s979_s4, 1024 }
   0x2   :  { %s25_s19 = sshll.u32 %s778_s18, 4  ;;  %p731_p0 = scmp.ne.s32.totalorder %s979_s4, %s730_s22  ;;  %s26_s19 = int_to_ptr.vmem [resolvable:$true] %s25_s19 }
   0x3   :  { %p734_p1 = scmp.lt.u32.totalorder %s730_s22, %s979_s4 }
   0x5   :  { %p736_p2 = pnand %p734_p1, %p731_p0 }
   0x7   :  { %739 = shalt.err (!%p736_p2)
}
   0x8   :  { %s740_s27 = scalar_lea.vmem %s26_s19, 1024  ;;  %p745_p4 = scmp.lt.s32.totalorder %s26_s19, %s26_s19 }
   0x9   :  { %p741_p3 = scmp.ne.s32.totalorder %s26_s19, %s740_s27  ;;  %p746_p5 = scmp.lt.s32.totalorder %s740_s27, %s740_s27 }
   0xb   :  { %p747_p6 = por %p746_p5, %p745_p4 }
   0xd   :  { %p748_p7 = pnand %p747_p6, %p741_p3 }
   0xf   :  { %751 = shalt.err (!%p748_p7)
}
  0x10   :  { %s779_s28 = smov 128   ;;  %s780_s29 = smov 8  }
  0x11   :  { %31 = dma.hbm_to_vmem [thread:$0]  %s979_s4, 1024, %s26_s19, [#allocation3], %s779_s28, %s779_s28, %s780_s29  }
  0x12   :  { %774 = dma.done.wait [#allocation3], 1024  }
  0x13   :  { %775 = vsyncadd [#allocation3], 4294966272  ;;  %v781_v0 = vmov 0   ;;  %v35_v1 = vld [vmem:[%s975_s0] sm:$0xff]  ;;  %v52_v4 = vld [vmem:[%s976_s1 + $0x8] sm:$0xff]  ;;  %v37_v20 = vlaneseq  ;;  %vm59_vm0 = vcmask 523264  }
  0x14   :  { %728 = vset.pattern.permute.xlu0 %v781_v0  ;;  %729 = vset.pattern.permute.xlu1 %v781_v0  ;;  %v51_v2 = vld [vmem:[%s976_s1] sm:$0xff]  ;;  %v451_v3 = vadd.s32 4294967232, %v35_v1  ;;  %v53_v5 = vld [vmem:[%s976_s1 + $0x10] sm:$0xff]  ;;  %v54_v6 = vld [vmem:[%s976_s1 + $0x18] sm:$0xff]  ;;  %v782_v23 = vmov 0.0   ;;  %v783_v33 = vmov 1.0  }
  0x15   :  { %40 = vperm.xlu0 %728, %v35_v1   ;;  %v36_v7 = vld [vmem:[%s975_s0 + $0x8] sm:$0xff]  ;;  %v623_v8 = vpack.c.bf16 %v52_v4, %v51_v2  ;;  %v627_v9 = vpack.c.bf16 %v54_v6, %v53_v5  ;;  %v55_v11 = vld [vmem:[%s976_s1 + $0x20] sm:$0xff]  ;;  %v57_v14 = vld [vmem:[%s976_s1 + $0x30] sm:$0xff]  ;;  %v38_v21 = vand.u32 127, %v37_v20  ;;  %s784_s11 = smov [#allocation5]  }
  0x16   :  { %v452_v10 = vadd.s32 4294967232, %v36_v7  ;;  %160 = vperm.xlu1 %729, %v451_v3   ;;  %v56_v12 = vld [vmem:[%s976_s1 + $0x28] sm:$0xff]  ;;  %v58_v15 = vld [vmem:[%s976_s1 + $0x38] sm:$0xff]  ;;  %v171_v17 = vld [vmem:[%s978_s3] sm:$0xff]  ;;  %s435_s12 = sshll.u32 %s784_s11, 4  ;;  %s436_s12 = int_to_ptr.vmem [resolvable:$true] %s435_s12 }
  0x17   :  { %624 = vmatprep.subr.bf16.mxu1 %v623_v8  ;;  %v631_v13 = vpack.c.bf16 %v56_v12, %v55_v11  ;;  %v635_v16 = vpack.c.bf16 %v58_v15, %v57_v14  ;;  %v172_v18 = vld [vmem:[%s978_s3 + $0x8] sm:$0xff]  ;;  %v173_v25 = vld [vmem:[%s978_s3 + $0x10] sm:$0xff]  ;;  %v174_v26 = vld [vmem:[%s978_s3 + $0x18] sm:$0xff]  ;;  %s752_s4 = scalar_lea.vmem %s436_s12, 256  ;;  %p757_p9 = scmp.lt.s32.totalorder %s436_s12, %s436_s12 }
  0x18   :  { %626 = vmatpush3.bf16.msra.mxu1 %v623_v8  ;;  %v639_v19 = vpack.c.bf16 %v172_v18, %v171_v17  ;;  %v643_v29 = vpack.c.bf16 %v174_v26, %v173_v25  ;;  %v175_v31 = vld [vmem:[%s978_s3 + $0x20] sm:$0xff]  ;;  %v176_v32 = vld [vmem:[%s978_s3 + $0x28] sm:$0xff]  ;;  %v177_v35 = vld [vmem:[%s978_s3 + $0x30] sm:$0xff]  ;;  %p753_p8 = scmp.ne.s32.totalorder %s436_s12, %s752_s4  ;;  %p758_p10 = scmp.lt.s32.totalorder %s752_s4, %s752_s4 }
  0x19   :  { %43 = vperm.xlu0 %728, %v36_v7   ;;  %628 = vmatprep.subr.bf16.mxu1 %v627_v9  ;;  %v647_v34 = vpack.c.bf16 %v176_v32, %v175_v31  ;;  %v178_v36 = vld [vmem:[%s978_s3 + $0x38] sm:$0xff]  ;;  %v179_v38 = vld [vmem:[%s978_s3 + $0x40] sm:$0xff]  ;;  %v180_v39 = vld [vmem:[%s978_s3 + $0x48] sm:$0xff] }
  0x1a   :  { %163 = vperm.xlu1 %729, %v452_v10   ;;  %v651_v37 = vpack.c.bf16 %v178_v36, %v177_v35  ;;  %v655_v40 = vpack.c.bf16 %v180_v39, %v179_v38  ;;  %v181_v41 = vld [vmem:[%s978_s3 + $0x50] sm:$0xff]  ;;  %v182_v42 = vld [vmem:[%s978_s3 + $0x58] sm:$0xff]  ;;  %v183_v44 = vld [vmem:[%s978_s3 + $0x60] sm:$0xff]  ;;  %p759_p11 = por %p758_p10, %p757_p9 }
  0x1b   :  { %v659_v43 = vpack.c.bf16 %v182_v42, %v181_v41  ;;  %v184_v45 = vld [vmem:[%s978_s3 + $0x68] sm:$0xff]  ;;  %v185_v47 = vld [vmem:[%s978_s3 + $0x70] sm:$0xff]  ;;  %v186_v48 = vld [vmem:[%s978_s3 + $0x78] sm:$0xff] }
  0x1c   :  { %630 = vmatpush3.bf16.msra.mxu1 %v627_v9  ;;  %v663_v46 = vpack.c.bf16 %v184_v45, %v183_v44  ;;  %v667_v49 = vpack.c.bf16 %v186_v48, %v185_v47  ;;  %v262_v51 = vld [vmem:[#allocation2] sm:$0xff]  ;;  %v263_v52 = vld [vmem:[#allocation2 + $0x8] sm:$0xff]  ;;  %v264_v53 = vld [vmem:[#allocation2 + $0x10] sm:$0xff]  ;;  %p760_p12 = pnand %p759_p11, %p753_p8 }
  0x1d   :  { %632 = vmatprep.subr.bf16.mxu1 %v631_v13  ;;  %v671_v54 = vpack.c.bf16 %v263_v52, %v262_v51  ;;  %v265_v55 = vld [vmem:[#allocation2 + $0x18] sm:$0xff]  ;;  %v266_v57 = vld [vmem:[#allocation2 + $0x20] sm:$0xff]  ;;  %v267_v58 = vld [vmem:[#allocation2 + $0x28] sm:$0xff] }
  0x1e   :  { %v675_v56 = vpack.c.bf16 %v265_v55, %v264_v53  ;;  %v679_v59 = vpack.c.bf16 %v267_v58, %v266_v57  ;;  %v268_v60 = vld [vmem:[#allocation2 + $0x30] sm:$0xff]  ;;  %v269_v61 = vld [vmem:[#allocation2 + $0x38] sm:$0xff]  ;;  %v143_v4 = vld [vmem:[%s977_s2 + $0x10] sm:$0xff] }
  0x1f   :  { %672 = vmatprep.subr.bf16.mxu0 %v671_v54  ;;  %v683_v62 = vpack.c.bf16 %v269_v61, %v268_v60  ;;  %v141_v63 = vld [vmem:[%s977_s2] sm:$0xff]  ;;  %v142_v0 = vld [vmem:[%s977_s2 + $0x8] sm:$0xff]  ;;  %v144_v5 = vld [vmem:[%s977_s2 + $0x18] sm:$0xff] }
  0x20   :  { %634 = vmatpush3.bf16.msra.mxu1 %v631_v13  ;;  %674 = vmatpush3.bf16.msra.mxu0 %v671_v54  ;;  %v687_v1 = vpack.c.bf16 %v142_v0, %v141_v63  ;;  %v691_v8 = vpack.c.bf16 %v144_v5, %v143_v4  ;;  %v145_v9 = vld [vmem:[%s977_s2 + $0x20] sm:$0xff]  ;;  %v146_v10 = vld [vmem:[%s977_s2 + $0x28] sm:$0xff]  ;;  %v147_v12 = vld [vmem:[%s977_s2 + $0x30] sm:$0xff] }
  0x21   :  { %636 = vmatprep.subr.bf16.mxu1 %v635_v16  ;;  %676 = vmatprep.subr.bf16.mxu0 %v675_v56  ;;  %v695_v11 = vpack.c.bf16 %v146_v10, %v145_v9  ;;  %v148_v13 = vld [vmem:[%s977_s2 + $0x38] sm:$0xff]  ;;  %v149_v15 = vld [vmem:[%s977_s2 + $0x40] sm:$0xff]  ;;  %v151_v18 = vld [vmem:[%s977_s2 + $0x50] sm:$0xff] }
  0x22   :  { %v699_v14 = vpack.c.bf16 %v148_v13, %v147_v12  ;;  %v156_v25 = vld [vmem:[%s977_s2 + $0x78] sm:$0xff] }
  0x24   :  { %638 = vmatpush3.bf16.msra.mxu1 %v635_v16  ;;  %678 = vmatpush3.bf16.msra.mxu0 %v675_v56  ;;  %v150_v16 = vld [vmem:[%s977_s2 + $0x48] sm:$0xff] }
  0x25   :  { %640 = vmatprep.subr.bf16.mxu1 %v639_v19  ;;  %680 = vmatprep.subr.bf16.mxu0 %v679_v59  ;;  %v703_v17 = vpack.c.bf16 %v150_v16, %v149_v15 }
  0x28   :  { %682 = vmatpush3.bf16.msra.mxu0 %v679_v59 }
  0x29   :  { %684 = vmatprep.subr.bf16.mxu0 %v683_v62 }
  0x2c   :  { %686 = vmatpush3.bf16.msra.mxu0 %v683_v62 }
  0x2d   :  { %688 = vmatprep.subr.bf16.mxu0 %v687_v1 }
  0x94   :  { %v41_v22 = vpop.permute.xlu0 %40 }
  0x95   :  { %vm45_vm1 = vcmp.eq.s32.totalorder %v38_v21, %v41_v22  ;;  %v161_v28 = vpop.permute.xlu1 %160  ;;  %v154_v22 = vld [vmem:[%s977_s2 + $0x68] sm:$0xff] }
  0x96   :  { %v447_v24 = vsel %vm45_vm1, 1.0, %v782_v23  ;;  %vm165_vm3 = vcmp.eq.s32.totalorder %v38_v21, %v161_v28 }
  0x97   :  { %531 = vmatprep.mubr.msk.f32.mxu1 %vm59_vm0, %v447_v24  ;;  %v155_v24 = vld [vmem:[%s977_s2 + $0x70] sm:$0xff] }
  0x98   :  { %v44_v27 = vpop.permute.xlu0 %43  ;;  %v715_v26 = vpack.c.bf16 %v156_v25, %v155_v24 }
  0x99   :  { %vm46_vm2 = vcmp.eq.s32.totalorder %v38_v21, %v44_v27  ;;  %v164_v50 = vpop.permute.xlu1 %163 }
  0x9a   :  { %v448_v30 = vsel %vm46_vm2, 1.0, %v782_v23  ;;  %vm166_vm4 = vcmp.eq.s32.totalorder %v38_v21, %v164_v50  ;;  %v153_v21 = vld [vmem:[%s977_s2 + $0x60] sm:$0xff] }
  0x9b   :  { %532 = vmatmul.mubr.msk.f32.vlgmr.msra.gmra.mrb[0].mxu1 %vm59_vm0, %v448_v30  ;;  %v711_v23 = vpack.c.bf16 %v154_v22, %v153_v21 }
  0x9c   :  { %642 = vmatpush3.bf16.msra.mxu1 %v639_v19  ;;  %566 = vmatprep.mubr.msk.f32.mxu1 %vm165_vm3, %v783_v33  ;;  %v152_v19 = vld [vmem:[%s977_s2 + $0x58] sm:$0xff] }
  0x9d   :  { %644 = vmatprep.subr.bf16.mxu1 %v643_v29  ;;  %v707_v20 = vpack.c.bf16 %v152_v19, %v151_v18 }
  0xa0   :  { %646 = vmatpush3.bf16.msra.mxu1 %v643_v29 }
  0xa1   :  { %648 = vmatprep.subr.bf16.mxu1 %v647_v34 }
  0xa4   :  { %650 = vmatpush3.bf16.msra.mxu1 %v647_v34 }
  0xa5   :  { %652 = vmatprep.subr.bf16.mxu1 %v651_v37 }
  0xa8   :  { %654 = vmatpush3.bf16.msra.mxu1 %v651_v37 }
  0xa9   :  { %656 = vmatprep.subr.bf16.mxu1 %v655_v40 }
  0xac   :  { %658 = vmatpush3.bf16.msra.mxu1 %v655_v40 }
  0xad   :  { %660 = vmatprep.subr.bf16.mxu1 %v659_v43 }
  0xb0   :  { %662 = vmatpush3.bf16.msra.mxu1 %v659_v43 }
  0xb1   :  { %664 = vmatprep.subr.bf16.mxu1 %v663_v46 }
  0xb4   :  { %666 = vmatpush3.bf16.msra.mxu1 %v663_v46 }
  0xb5   :  { %668 = vmatprep.subr.bf16.mxu1 %v667_v49 }
  0xb8   :  { %670 = vmatpush3.bf16.msra.mxu1 %v667_v49 }
  0xbb   :  { %567 = vmatmul.mubr.msk.f32.vlgmr.msra.gmra.mrb[2].mxu1 %vm166_vm4, %v783_v33 }
 0x16e   :  { %v533_v2 = vpop.f32.mrb[0].mxu1 }
 0x16f   :  { %v132_v3 = vpop.f32.mrb[1].mxu1 }
 0x18e   :  { %v568_v6 = vpop.f32.mrb[2].mxu1 }
 0x18f   :  { %v253_v7 = vpop.f32.mrb[3].mxu1 }
 0x190   :  { %585 = vmatprep.mubr.msk.f32.mxu0 %vm59_vm0, %v253_v7 }
 0x191   :  { %586 = vmatmul.mubr.msk.f32.vlgmr.msra.gmra.mrb[0].mxu0 %vm59_vm0, %v568_v6 }
 0x192   :  { %690 = vmatpush3.bf16.msra.mxu0 %v687_v1  ;;  %620 = vmatprep.mubr.f32.mxu0 %v132_v3 }
 0x193   :  { %692 = vmatprep.subr.bf16.mxu0 %v691_v8 }
 0x196   :  { %694 = vmatpush3.bf16.msra.mxu0 %v691_v8 }
 0x197   :  { %696 = vmatprep.subr.bf16.mxu0 %v695_v11 }
 0x19a   :  { %698 = vmatpush3.bf16.msra.mxu0 %v695_v11 }
 0x19b   :  { %700 = vmatprep.subr.bf16.mxu0 %v699_v14 }
 0x19e   :  { %702 = vmatpush3.bf16.msra.mxu0 %v699_v14 }
 0x19f   :  { %704 = vmatprep.subr.bf16.mxu0 %v703_v17 }
 0x1a2   :  { %706 = vmatpush3.bf16.msra.mxu0 %v703_v17 }
 0x1a3   :  { %708 = vmatprep.subr.bf16.mxu0 %v707_v20 }
 0x1a6   :  { %710 = vmatpush3.bf16.msra.mxu0 %v707_v20 }
 0x1a7   :  { %712 = vmatprep.subr.bf16.mxu0 %v711_v23 }
 0x1aa   :  { %714 = vmatpush3.bf16.msra.mxu0 %v711_v23 }
 0x1ab   :  { %716 = vmatprep.subr.bf16.mxu0 %v715_v26 }
 0x1ae   :  { %718 = vmatpush3.bf16.msra.mxu0 %v715_v26 }
 0x1b1   :  { %621 = vmatmul.mubr.f32.vlgmr.msra.gmra.mrb[0].mxu0 %v533_v2 }
 0x284   :  { %v622_v27 = vpop.f32.mrb[0].mxu0 }
 0x285   :  { %v427_v28 = vmul.f32 11.313708, %v622_v27  ;;  %v417_v29 = vpop.f32.mrb[1].mxu0 }
 0x286   :  { %v426_v30 = vmul.f32 11.313708, %v417_v29 }
 0x287   :  { %429 = vst [vmem:[#allocation5 + $0x8] sm:$0xff] %v427_v28 }
 0x288   :  { %428 = vst [vmem:[#allocation5] sm:$0xff] %v426_v30 }
 0x289   :  { %763 = shalt.err (!%p760_p12)
}
 0x28a   :  { %s764_s14 = scalar_lea.hbm %s980_s5, 256 }
 0x28b   :  { %p765_p13 = scmp.ne.s32.totalorder %s980_s5, %s764_s14  ;;  %p768_p0 = scmp.lt.u32.totalorder %s764_s14, %s980_s5 }
 0x28d   :  { %p770_p1 = pnand %p768_p0, %p765_p13 }
 0x28f   :  { %773 = shalt.err (!%p770_p1)
}
 0x290   :  { %441 = dma.vmem_to_hbm [thread:$0]  %s436_s12, 256, %s980_s5, [#allocation4], %s779_s28, %s779_s28, %s780_s29  }
 0x291   :  { %776 = dma.done.wait [#allocation4], 256  }
 0x292   :  { %777 = vsyncadd [#allocation4], 4294967040 }
 0x293   :  { %445 = vsyncpa [#allocation3], 1 }
 0x294   :  { %446 = vsyncpa [#allocation4], 1 }

</bundles_post_ra>
